<compile_context>
chip_gen: v7x
topology: tpu7x:2x2x1
jax: 0.10.0
libtpu: 0.0.40
codegen_flags: <defaults>
</compile_context>

<pallas_src>
import jax
import jax.numpy as jnp
from jax.experimental import pallas as pl
from jax.experimental.pallas import tpu as pltpu


def ffn_kernel(x_ref, w1_ref, w3_ref, w2_ref, out_ref):
  """grid = (row_tiles, hid_tiles); hid axis reduces directly into out_ref."""
  k = pl.program_id(1)

  # Cast activations to bf16 in-kernel (cheap VPU work hidden under the MXU).
  x = x_ref[...].astype(jnp.bfloat16)                              # (tm, D)

  # Lane-dense MXU matmuls: bf16 operands, f32 accumulation.
  g = jnp.dot(x, w1_ref[...], preferred_element_type=jnp.float32)  # (tm, th)
  u = jnp.dot(x, w3_ref[...], preferred_element_type=jnp.float32)  # (tm, th)
  h = (g * jax.nn.sigmoid(g)) * u                                  # silu(g)*u, f32
  contrib = jnp.dot(h.astype(w2_ref.dtype), w2_ref[...],
                    preferred_element_type=jnp.float32)            # (tm, D)

  @pl.when(k == 0)
  def _first():
    out_ref[...] = contrib          # skip zero-init + first read-modify-write

  @pl.when(k > 0)
  def _accumulate():
    out_ref[...] += contrib


def prepare_weights(w1, w2, w3):
  """One-time layout transform (do this OUTSIDE the per-call hot path).

  PyTorch nn.Linear layout in:  w1, w3: (HID, D);  w2: (D, HID).
  Kernel layout out (bf16):     w1t, w3t: (D, HID);  w2t: (HID, D).
  """
  w1t = jnp.asarray(w1).T.astype(jnp.bfloat16)
  w3t = jnp.asarray(w3).T.astype(jnp.bfloat16)
  w2t = jnp.asarray(w2).T.astype(jnp.bfloat16)
  return w1t, w3t, w2t


def _pick_tile(extent, target, multiple):
  """Largest tile <= target that divides extent and is a multiple of `multiple`."""
  target = min(target, extent)
  t = (target // multiple) * multiple
  while t >= multiple:
    if extent % t == 0:
      return t
    t -= multiple
  return extent


def feed_forward(x, w1t, w3t, w2t, *, tm_target=512, th_target=512):
  """x: (B, S, D) f32.  w1t/w3t: (D, HID) bf16;  w2t: (HID, D) bf16 (prepared)."""
  B, S, D = x.shape
  HID = w1t.shape[1]
  rows = B * S

  assert D % 128 == 0, "model dim must be a multiple of 128 (lane width)"
  assert HID % 128 == 0, "hidden dim must be a multiple of 128 (lane width)"

  # Row tile: large for weight-stream arithmetic intensity, but keep >= 2 row
  # tiles when there is enough work so the 'parallel' axis can shard across
  # both TensorCores on multi-TC chips (v7x).
  row_target = tm_target
  if rows >= 256:
    row_target = min(row_target, rows // 2)
  tm = _pick_tile(rows, row_target, 16)      # 16: bf16 sublane packing friendly
  th = _pick_tile(HID, th_target, 128)

  assert rows % tm == 0 and HID % th == 0

  x2 = x.reshape(rows, D)                    # stays f32; cast happens in-kernel
  grid = (rows // tm, HID // th)

  # VMEM budget: double-buffered x / weights / output blocks + headroom.
  bytes_x = tm * D * 4
  bytes_out = tm * D * 4
  bytes_w = 3 * D * th * 2
  vmem_need = 2 * (bytes_x + bytes_out + bytes_w) + (4 << 20)
  vmem_limit = int(min(max(vmem_need, 32 << 20), 100 << 20))

  cost = pl.CostEstimate(
      flops=6 * rows * D * HID,               # 3 matmuls, 2 flop per MAC
      transcendentals=rows * HID,             # sigmoid in silu
      bytes_accessed=rows * D * 4             # x read
                     + 3 * D * HID * 2        # weights read (once per row tile amortized)
                     + rows * D * 4,          # out write
  )

  out = pl.pallas_call(
      ffn_kernel,
      out_shape=jax.ShapeDtypeStruct((rows, D), jnp.float32),
      grid=grid,
      in_specs=[
          pl.BlockSpec((tm, D), lambda i, k: (i, 0)),   # x rows (constant over k)
          pl.BlockSpec((D, th), lambda i, k: (0, k)),   # W1^T hidden tile
          pl.BlockSpec((D, th), lambda i, k: (0, k)),   # W3^T hidden tile
          pl.BlockSpec((th, D), lambda i, k: (k, 0)),   # W2^T hidden tile
      ],
      # Output block is index-constant over k -> resident f32 accumulator.
      out_specs=pl.BlockSpec((tm, D), lambda i, k: (i, 0)),
      compiler_params=pltpu.CompilerParams(
          dimension_semantics=("parallel", "arbitrary"),
          vmem_limit_bytes=vmem_limit,
      ),
      cost_estimate=cost,
  )(x2, w1t, w3t, w2t)

  return out.reshape(B, S, D)


def feed_forward_module(x, w1, w2, w3):
  """Convenience wrapper taking PyTorch-layout f32 weights (prepare inside)."""
  w1t, w3t, w2t = prepare_weights(w1, w2, w3)
  return feed_forward(x, w1t, w3t, w2t)


# ----------------------------------------------------------------------------
# Pure-JAX reference (mirrors the PyTorch forward exactly, f32 everywhere).
# ----------------------------------------------------------------------------
def reference_ffn(x, w1, w2, w3):
  g = x @ w1.T
  u = x @ w3.T
  return (jax.nn.silu(g) * u) @ w2.T


if __name__ == "__main__":
  B, S, D, HID = 2, 8, 128, 512
  key = jax.random.PRNGKey(0)
  k1, k2, k3, kx = jax.random.split(key, 4)
  sc = 0.05
  W1 = jax.random.normal(k1, (HID, D), jnp.float32) * sc   # nn.Linear(dim, hidden)
  W2 = jax.random.normal(k2, (D, HID), jnp.float32) * sc   # nn.Linear(hidden, dim)
  W3 = jax.random.normal(k3, (HID, D), jnp.float32) * sc   # nn.Linear(dim, hidden)
  x = jax.random.normal(kx, (B, S, D), jnp.float32)

  # Weight layout transform happens once, outside the hot path.
  W1t, W3t, W2t = prepare_weights(W1, W2, W3)

  out = jax.block_until_ready(feed_forward(x, W1t, W3t, W2t))
  ref = jax.block_until_ready(reference_ffn(x, W1, W2, W3))

  err = float(jnp.max(jnp.abs(out - ref)))
  # bf16 matmul operands with f32 accumulation -> small truncation error.
  assert err < 2e-2, f"max abs error too large: {err}"
  print("KERNEL_OK")
</pallas_src>

<mosaic_0001>
module attributes {stable_mosaic.version = 11 : i64} {
  func.func @ffn_kernel(%arg0: i32, %arg1: i32, %arg2: memref<16x128xf32, #tpu.memory_space<vmem>>, %arg3: memref<128x512xbf16, #tpu.memory_space<vmem>>, %arg4: memref<128x512xbf16, #tpu.memory_space<vmem>>, %arg5: memref<512x128xbf16, #tpu.memory_space<vmem>>, %arg6: memref<16x128xf32, #tpu.memory_space<vmem>>) attributes {dimension_semantics = [#tpu.dimension_semantics<parallel>, #tpu.dimension_semantics<arbitrary>], iteration_bounds = array<i64: 1, 1>, scalar_prefetch = 0 : i64, scratch_operands = 0 : i64, tpu.core_type = #tpu.core_type<tc>, window_params = [{transform_indices = @transform_0, window_bounds = array<i64: 16, 128>}, {transform_indices = @transform_1, window_bounds = array<i64: 128, 512>}, {transform_indices = @transform_2, window_bounds = array<i64: 128, 512>}, {transform_indices = @transform_3, window_bounds = array<i64: 512, 128>}, {transform_indices = @transform_4, window_bounds = array<i64: 16, 128>}]} {
    %c0 = arith.constant 0 : index
    %c0_0 = arith.constant 0 : index
    %0 = vector.load %arg2[%c0, %c0_0] : memref<16x128xf32, #tpu.memory_space<vmem>>, vector<16x128xf32>
    %1 = arith.truncf %0 : vector<16x128xf32> to vector<16x128xbf16>
    %c0_1 = arith.constant 0 : index
    %c0_2 = arith.constant 0 : index
    %2 = vector.load %arg3[%c0_1, %c0_2] : memref<128x512xbf16, #tpu.memory_space<vmem>>, vector<128x512xbf16>
    %cst = arith.constant dense<0.000000e+00> : vector<16x512xf32>
    %3 = tpu.matmul %1, %2, %cst {dimension_numbers = #tpu.dot_dimension_numbers<[1], [0], [0], [1], [0, 0, 1, 1], [], []>} : vector<16x128xbf16>, vector<128x512xbf16>, vector<16x512xf32> -> vector<16x512xf32>
    %c0_3 = arith.constant 0 : index
    %c0_4 = arith.constant 0 : index
    %4 = vector.load %arg4[%c0_3, %c0_4] : memref<128x512xbf16, #tpu.memory_space<vmem>>, vector<128x512xbf16>
    %cst_5 = arith.constant dense<0.000000e+00> : vector<16x512xf32>
    %5 = tpu.matmul %1, %4, %cst_5 {dimension_numbers = #tpu.dot_dimension_numbers<[1], [0], [0], [1], [0, 0, 1, 1], [], []>} : vector<16x128xbf16>, vector<128x512xbf16>, vector<16x512xf32> -> vector<16x512xf32>
    %6 = arith.negf %3 : vector<16x512xf32>
    %7 = math.exp %6 : vector<16x512xf32>
    %cst_6 = arith.constant 1.000000e+00 : f32
    %8 = vector.broadcast %cst_6 : f32 to vector<16x512xf32>
    %9 = arith.addf %8, %7 : vector<16x512xf32>
    %10 = arith.divf %8, %9 : vector<16x512xf32>
    %11 = arith.mulf %3, %10 : vector<16x512xf32>
    %12 = arith.mulf %11, %5 : vector<16x512xf32>
    %13 = arith.truncf %12 : vector<16x512xf32> to vector<16x512xbf16>
    %c0_7 = arith.constant 0 : index
    %c0_8 = arith.constant 0 : index
    %14 = vector.load %arg5[%c0_7, %c0_8] : memref<512x128xbf16, #tpu.memory_space<vmem>>, vector<512x128xbf16>
    %cst_9 = arith.constant dense<0.000000e+00> : vector<16x128xf32>
    %15 = tpu.matmul %13, %14, %cst_9 {dimension_numbers = #tpu.dot_dimension_numbers<[1], [0], [0], [1], [0, 0, 1, 1], [], []>} : vector<16x512xbf16>, vector<512x128xbf16>, vector<16x128xf32> -> vector<16x128xf32>
    %c0_i32 = arith.constant 0 : i32
    %16 = arith.cmpi eq, %arg1, %c0_i32 : i32
    %17 = arith.extui %16 : i1 to i32
    %c0_i32_10 = arith.constant 0 : i32
    %18 = arith.cmpi ne, %17, %c0_i32_10 : i32
    scf.if %18 {
      %c0_13 = arith.constant 0 : index
      %c0_14 = arith.constant 0 : index
      %22 = vector.load %arg6[%c0_13, %c0_14] : memref<16x128xf32, #tpu.memory_space<vmem>>, vector<16x128xf32>
      tpu.vector_store %arg6[%c0_13, %c0_14], %15 {strides = array<i32>} : memref<16x128xf32, #tpu.memory_space<vmem>>, vector<16x128xf32>,
    } else {
    }
    %c0_i32_11 = arith.constant 0 : i32
    %19 = arith.cmpi sgt, %arg1, %c0_i32_11 : i32
    %20 = arith.extui %19 : i1 to i32
    %c0_i32_12 = arith.constant 0 : i32
    %21 = arith.cmpi ne, %20, %c0_i32_12 : i32
    scf.if %21 {
      %c0_13 = arith.constant 0 : index
      %c0_14 = arith.constant 0 : index
      %22 = vector.load %arg6[%c0_13, %c0_14] : memref<16x128xf32, #tpu.memory_space<vmem>>, vector<16x128xf32>
      %23 = arith.addf %22, %15 : vector<16x128xf32>
      %c0_15 = arith.constant 0 : index
      %c0_16 = arith.constant 0 : index
      %24 = vector.load %arg6[%c0_15, %c0_16] : memref<16x128xf32, #tpu.memory_space<vmem>>, vector<16x128xf32>
      tpu.vector_store %arg6[%c0_15, %c0_16], %23 {strides = array<i32>} : memref<16x128xf32, #tpu.memory_space<vmem>>, vector<16x128xf32>,
    } else {
    }
    return
  }
  func.func @transform_0(%arg0: i32, %arg1: i32) -> (i32, i32) {
    %c0_i32 = arith.constant 0 : i32
    %c0_i32_0 = arith.constant 0 : i32
    return %arg0, %c0_i32 : i32, i32
  }
  func.func @transform_1(%arg0: i32, %arg1: i32) -> (i32, i32) {
    %c0_i32 = arith.constant 0 : i32
    %c0_i32_0 = arith.constant 0 : i32
    return %c0_i32, %arg1 : i32, i32
  }
  func.func @transform_2(%arg0: i32, %arg1: i32) -> (i32, i32) {
    %c0_i32 = arith.constant 0 : i32
    %c0_i32_0 = arith.constant 0 : i32
    return %c0_i32, %arg1 : i32, i32
  }
  func.func @transform_3(%arg0: i32, %arg1: i32) -> (i32, i32) {
    %c0_i32 = arith.constant 0 : i32
    %c0_i32_0 = arith.constant 0 : i32
    return %arg1, %c0_i32 : i32, i32
  }
  func.func @transform_4(%arg0: i32, %arg1: i32) -> (i32, i32) {
    %c0_i32 = arith.constant 0 : i32
    %c0_i32_0 = arith.constant 0 : i32
    return %arg0, %c0_i32 : i32, i32
  }
}

</mosaic_0001>

<bundles_post_ra>
// kernel: tpu_custom_call.1
= control target key start
LH: loop header
LB: loop body
LE: loop exit
PB: predicated region body
PF: predicated region fallthrough
CT: control target
= control target key end

     0   :  { %9 = vsyncpa [#allocation3], 0  ;;  %s1638_s0 = inlined_call_operand.hbm [shape: f32[16,128], index: 0, kind: input, shape index: {}]   ;;  %s1639_s1 = inlined_call_operand.hbm [shape: bf16[128,512], index: 1, kind: input, shape index: {}]   ;;  %s1640_s2 = inlined_call_operand.hbm [shape: bf16[128,512], index: 2, kind: input, shape index: {}]   ;;  %s1641_s3 = inlined_call_operand.hbm [shape: bf16[512,128], index: 3, kind: input, shape index: {}]   ;;  %s1642_s4 = inlined_call_operand.hbm [shape: f32[16,128], index: 4, kind: output, shape index: {}]  }
   0x1   :  { %10 = vsyncpa [#allocation6], 0 }
   0x2   :  { %11 = vsyncpa [#allocation9], 0 }
   0x3   :  { %12 = vsyncpa [#allocation4], 0  ;;  %s1512_s15 = smov [#allocation5]   ;;  %s1394_s19 = scalar_lea.hbm %s1639_s1, 4096 }
   0x4   :  { %s30_s16 = sshll.u32 %s1512_s15, 4  ;;  %p1395_p0 = scmp.ne.s32.totalorder %s1639_s1, %s1394_s19  ;;  %s31_s16 = int_to_ptr.vmem [resolvable:$true] %s30_s16 }
   0x5   :  { %p1398_p1 = scmp.lt.u32.totalorder %s1394_s19, %s1639_s1 }
   0x7   :  { %p1400_p2 = pnand %p1398_p1, %p1395_p0 }
   0x9   :  { %1403 = shalt.err (!%p1400_p2)
}
   0xa   :  { %s1404_s24 = scalar_lea.vmem %s31_s16, 4096  ;;  %p1409_p4 = scmp.lt.s32.totalorder %s31_s16, %s31_s16 }
   0xb   :  { %p1405_p3 = scmp.ne.s32.totalorder %s31_s16, %s1404_s24  ;;  %p1410_p5 = scmp.lt.s32.totalorder %s1404_s24, %s1404_s24 }
   0xd   :  { %p1411_p6 = por %p1410_p5, %p1409_p4 }
   0xf   :  { %p1412_p7 = pnand %p1411_p6, %p1405_p3 }
  0x11   :  { %1415 = shalt.err (!%p1412_p7)
}
  0x12   :  { %s1513_s25 = smov 256   ;;  %s1514_s26 = smov 16  }
  0x13   :  { %36 = dma.hbm_to_vmem [thread:$0]  %s1639_s1, 4096, %s31_s16, [#allocation6], %s1513_s25, %s1513_s25, %s1514_s26  }
  0x14   :  { %s1515_s29 = smov [#allocation2]   ;;  %s1416_s7 = scalar_lea.hbm %s1638_s0, 256 }
  0x15   :  { %s18_s30 = sshll.u32 %s1515_s29, 4  ;;  %p1417_p8 = scmp.ne.s32.totalorder %s1638_s0, %s1416_s7  ;;  %s19_s30 = int_to_ptr.vmem [resolvable:$true] %s18_s30 }
  0x16   :  { %p1420_p9 = scmp.lt.u32.totalorder %s1416_s7, %s1638_s0 }
  0x18   :  { %p1422_p10 = pnand %p1420_p9, %p1417_p8 }
  0x1a   :  { %1425 = shalt.err (!%p1422_p10)
}
  0x1b   :  { %s1426_s12 = scalar_lea.vmem %s19_s30, 256  ;;  %p1431_p12 = scmp.lt.s32.totalorder %s19_s30, %s19_s30 }
  0x1c   :  { %p1427_p11 = scmp.ne.s32.totalorder %s19_s30, %s1426_s12  ;;  %p1432_p13 = scmp.lt.s32.totalorder %s1426_s12, %s1426_s12 }
  0x1e   :  { %p1433_p0 = por %p1432_p13, %p1431_p12 }
  0x20   :  { %p1434_p1 = pnand %p1433_p0, %p1427_p11 }
  0x22   :  { %1437 = shalt.err (!%p1434_p1)
}
  0x23   :  { %s1516_s1 = smov 128   ;;  %s1517_s13 = smov 8  }
  0x24   :  { %24 = dma.hbm_to_vmem [thread:$0]  %s1638_s0, 256, %s19_s30, [#allocation3], %s1516_s1, %s1516_s1, %s1517_s13  }
  0x25   :  { %s1518_s16 = smov [#allocation7]   ;;  %s1519_s18 = smov [#allocation8]  }
  0x26   :  { %s42_s17 = sshll.u32 %s1518_s16, 4  ;;  %s54_s19 = sshll.u32 %s1519_s18, 4  ;;  %s43_s17 = int_to_ptr.vmem [resolvable:$true] %s42_s17  ;;  %s1579_s19 = int_to_ptr.vmem [resolvable:$true] %s54_s19 }
  0x27   :  { %s1438_s22 = scalar_lea.hbm %s1640_s2, 4096 }
  0x28   :  { %p1439_p2 = scmp.ne.s32.totalorder %s1640_s2, %s1438_s22  ;;  %p1442_p3 = scmp.lt.u32.totalorder %s1438_s22, %s1640_s2 }
  0x2a   :  { %p1444_p4 = pnand %p1442_p3, %p1439_p2 }
  0x2c   :  { %1447 = shalt.err (!%p1444_p4)
}
  0x2d   :  { %s1448_s0 = scalar_lea.vmem %s43_s17, 4096  ;;  %p1453_p6 = scmp.lt.s32.totalorder %s43_s17, %s43_s17 }
  0x2e   :  { %p1449_p5 = scmp.ne.s32.totalorder %s43_s17, %s1448_s0  ;;  %p1454_p7 = scmp.lt.s32.totalorder %s1448_s0, %s1448_s0 }
  0x30   :  { %p1455_p8 = por %p1454_p7, %p1453_p6 }
  0x32   :  { %p1456_p9 = pnand %p1455_p8, %p1449_p5 }
  0x34   :  { %1459 = shalt.err (!%p1456_p9)
}
  0x35   :  { %48 = dma.hbm_to_vmem [thread:$0]  %s1640_s2, 4096, %s43_s17, [#allocation6], %s1513_s25, %s1513_s25, %s1514_s26  }
  0x36   :  { %s1460_s7 = scalar_lea.hbm %s1641_s3, 4096 }
  0x37   :  { %p1461_p10 = scmp.ne.s32.totalorder %s1641_s3, %s1460_s7  ;;  %p1464_p11 = scmp.lt.u32.totalorder %s1460_s7, %s1641_s3 }
  0x39   :  { %p1466_p12 = pnand %p1464_p11, %p1461_p10 }
  0x3b   :  { %1469 = shalt.err (!%p1466_p12)
}
  0x3c   :  { %s1470_s12 = scalar_lea.vmem %s1579_s19, 4096  ;;  %p1475_p0 = scmp.lt.s32.totalorder %s1579_s19, %s1579_s19 }
  0x3d   :  { %p1471_p13 = scmp.ne.s32.totalorder %s1579_s19, %s1470_s12  ;;  %p1476_p1 = scmp.lt.s32.totalorder %s1470_s12, %s1470_s12 }
  0x3f   :  { %p1477_p2 = por %p1476_p1, %p1475_p0 }
  0x41   :  { %p1478_p3 = pnand %p1477_p2, %p1471_p13 }
  0x43   :  { %1481 = shalt.err (!%p1478_p3)
}
  0x44   :  { %s1520_s2 = smov 64   ;;  %s1521_s25 = smov 4  }
  0x45   :  { %60 = dma.hbm_to_vmem [thread:$0]  %s1641_s3, 4096, %s1579_s19, [#allocation9], %s1520_s2, %s1520_s2, %s1521_s25  }
  0x46   :  { %1504 = dma.done.wait [#allocation3], 256  }
  0x47   :  { %1505 = vsyncadd [#allocation3], 4294967040 }
  0x48   :  { %1506 = dma.done.wait [#allocation6], 8192  }
  0x49   :  { %1507 = vsyncadd [#allocation6], 4294959104 }
  0x4a   :  { %1508 = dma.done.wait [#allocation9], 4096  }
  0x4b   :  { %1509 = vsyncadd [#allocation9], 4294963200  ;;  %v1522_v0 = vmov 0   ;;  %v1234_v1 = vld [vmem:[#allocation5 + $0x4] ss:$16 sps:$4 sm:$0xff]   ;;  %v75_v34 = vld [vmem:[#allocation2 + $0x8] sm:$0xff] }
  0x4c   :  { %301 = vmatprep.mubr.bf16.mxu0 %v1522_v0  ;;  %344 = vmatprep.mubr.bf16.mxu1 %v1522_v0  ;;  %v1236_v2 = vld [vmem:[#allocation5 + $0xc] ss:$16 sps:$4 sm:$0xff]   ;;  %v1238_v3 = vld [vmem:[#allocation5] ss:$16 sps:$4 sm:$0xff]   ;;  %v1239_v4 = vld [vmem:[#allocation5 + $0x8] ss:$16 sps:$4 sm:$0xff]  }
  0x4d   :  { %269 = vmatprep.subr.bf16.mxu0 %v1234_v1  ;;  %312 = vmatprep.subr.bf16.mxu1 %v1236_v2  ;;  %v1240_v5 = vld [vmem:[#allocation5 + $0x24] ss:$16 sps:$4 sm:$0xff]   ;;  %v1242_v6 = vld [vmem:[#allocation5 + $0x2c] ss:$16 sps:$4 sm:$0xff]   ;;  %v1244_v7 = vld [vmem:[#allocation5 + $0x20] ss:$16 sps:$4 sm:$0xff]  }
  0x4e   :  { %270 = vmatpush1.bf16.msra.mxu0 %v1238_v3  ;;  %313 = vmatpush1.bf16.msra.mxu1 %v1239_v4  ;;  %v1245_v8 = vld [vmem:[#allocation5 + $0x28] ss:$16 sps:$4 sm:$0xff]   ;;  %v1246_v9 = vld [vmem:[#allocation5 + $0x44] ss:$16 sps:$4 sm:$0xff]   ;;  %v1248_v10 = vld [vmem:[#allocation5 + $0x4c] ss:$16 sps:$4 sm:$0xff]  }
  0x4f   :  { %271 = vmatprep.subr.bf16.mxu0 %v1240_v5  ;;  %314 = vmatprep.subr.bf16.mxu1 %v1242_v6  ;;  %v1250_v11 = vld [vmem:[#allocation5 + $0x40] ss:$16 sps:$4 sm:$0xff]   ;;  %v1251_v12 = vld [vmem:[#allocation5 + $0x48] ss:$16 sps:$4 sm:$0xff]   ;;  %v1252_v13 = vld [vmem:[#allocation5 + $0x64] ss:$16 sps:$4 sm:$0xff]  }
  0x50   :  { %v1254_v14 = vld [vmem:[#allocation5 + $0x6c] ss:$16 sps:$4 sm:$0xff]   ;;  %v1256_v15 = vld [vmem:[#allocation5 + $0x60] ss:$16 sps:$4 sm:$0xff]   ;;  %v1257_v16 = vld [vmem:[#allocation5 + $0x68] ss:$16 sps:$4 sm:$0xff]  }
  0x51   :  { %v1258_v17 = vld [vmem:[#allocation5 + $0x84] ss:$16 sps:$4 sm:$0xff]   ;;  %v1260_v18 = vld [vmem:[#allocation5 + $0x8c] ss:$16 sps:$4 sm:$0xff]   ;;  %v1262_v19 = vld [vmem:[#allocation5 + $0x80] ss:$16 sps:$4 sm:$0xff]  }
  0x52   :  { %272 = vmatpush1.bf16.msra.mxu0 %v1244_v7  ;;  %315 = vmatpush1.bf16.msra.mxu1 %v1245_v8  ;;  %v1263_v20 = vld [vmem:[#allocation5 + $0x88] ss:$16 sps:$4 sm:$0xff]   ;;  %v1264_v21 = vld [vmem:[#allocation5 + $0xa4] ss:$16 sps:$4 sm:$0xff]   ;;  %v1266_v22 = vld [vmem:[#allocation5 + $0xac] ss:$16 sps:$4 sm:$0xff]  }
  0x53   :  { %273 = vmatprep.subr.bf16.mxu0 %v1246_v9  ;;  %316 = vmatprep.subr.bf16.mxu1 %v1248_v10  ;;  %v1268_v23 = vld [vmem:[#allocation5 + $0xa0] ss:$16 sps:$4 sm:$0xff]   ;;  %v1269_v24 = vld [vmem:[#allocation5 + $0xa8] ss:$16 sps:$4 sm:$0xff]   ;;  %v1270_v25 = vld [vmem:[#allocation5 + $0xc4] ss:$16 sps:$4 sm:$0xff]  }
  0x54   :  { %v1272_v26 = vld [vmem:[#allocation5 + $0xcc] ss:$16 sps:$4 sm:$0xff]   ;;  %v1274_v27 = vld [vmem:[#allocation5 + $0xc0] ss:$16 sps:$4 sm:$0xff]   ;;  %v1275_v28 = vld [vmem:[#allocation5 + $0xc8] ss:$16 sps:$4 sm:$0xff]  }
  0x55   :  { %v1276_v29 = vld [vmem:[#allocation5 + $0xe4] ss:$16 sps:$4 sm:$0xff]   ;;  %v1278_v30 = vld [vmem:[#allocation5 + $0xec] ss:$16 sps:$4 sm:$0xff]   ;;  %v1280_v31 = vld [vmem:[#allocation5 + $0xe0] ss:$16 sps:$4 sm:$0xff]  }
  0x56   :  { %274 = vmatpush1.bf16.msra.mxu0 %v1250_v11  ;;  %317 = vmatpush1.bf16.msra.mxu1 %v1251_v12  ;;  %v1281_v32 = vld [vmem:[#allocation5 + $0xe8] ss:$16 sps:$4 sm:$0xff]   ;;  %v74_v33 = vld [vmem:[#allocation2] sm:$0xff]  ;;  %v1287_v36 = vld [vmem:[#allocation7 + $0xc] ss:$16 sps:$4 sm:$0xff]   ;;  %s1523_s3 = smov [#allocation10]  }
  0x57   :  { %275 = vmatprep.subr.bf16.mxu0 %v1252_v13  ;;  %318 = vmatprep.subr.bf16.mxu1 %v1254_v14  ;;  %v1284_v35 = vld [vmem:[#allocation7 + $0x4] ss:$16 sps:$4 sm:$0xff]   ;;  %v1615_v37 = vpack.c.bf16 %v75_v34, %v74_v33  ;;  %v1282_v38 = vld [vmem:[#allocation7] ss:$16 sps:$4 sm:$0xff]   ;;  %v1285_v39 = vld [vmem:[#allocation7 + $0x8] ss:$16 sps:$4 sm:$0xff]  }
  0x58   :  { %v1290_v40 = vld [vmem:[#allocation7 + $0x24] ss:$16 sps:$4 sm:$0xff]   ;;  %v1293_v41 = vld [vmem:[#allocation7 + $0x2c] ss:$16 sps:$4 sm:$0xff]   ;;  %v1288_v42 = vld [vmem:[#allocation7 + $0x20] ss:$16 sps:$4 sm:$0xff]  }
  0x59   :  { %v1291_v43 = vld [vmem:[#allocation7 + $0x28] ss:$16 sps:$4 sm:$0xff]   ;;  %v1296_v44 = vld [vmem:[#allocation7 + $0x44] ss:$16 sps:$4 sm:$0xff]   ;;  %v1299_v45 = vld [vmem:[#allocation7 + $0x4c] ss:$16 sps:$4 sm:$0xff]  }
  0x5a   :  { %276 = vmatpush1.bf16.msra.mxu0 %v1256_v15  ;;  %319 = vmatpush1.bf16.msra.mxu1 %v1257_v16  ;;  %v1294_v46 = vld [vmem:[#allocation7 + $0x40] ss:$16 sps:$4 sm:$0xff]   ;;  %v1297_v47 = vld [vmem:[#allocation7 + $0x48] ss:$16 sps:$4 sm:$0xff]   ;;  %v1302_v48 = vld [vmem:[#allocation7 + $0x64] ss:$16 sps:$4 sm:$0xff]  }
  0x5b   :  { %277 = vmatprep.subr.bf16.mxu0 %v1258_v17  ;;  %320 = vmatprep.subr.bf16.mxu1 %v1260_v18  ;;  %v1305_v49 = vld [vmem:[#allocation7 + $0x6c] ss:$16 sps:$4 sm:$0xff]   ;;  %v1300_v50 = vld [vmem:[#allocation7 + $0x60] ss:$16 sps:$4 sm:$0xff]   ;;  %v1303_v51 = vld [vmem:[#allocation7 + $0x68] ss:$16 sps:$4 sm:$0xff]  }
  0x5c   :  { %v1308_v52 = vld [vmem:[#allocation7 + $0x84] ss:$16 sps:$4 sm:$0xff]   ;;  %v1311_v53 = vld [vmem:[#allocation7 + $0x8c] ss:$16 sps:$4 sm:$0xff]   ;;  %v1306_v54 = vld [vmem:[#allocation7 + $0x80] ss:$16 sps:$4 sm:$0xff]  }
  0x5d   :  { %v1309_v55 = vld [vmem:[#allocation7 + $0x88] ss:$16 sps:$4 sm:$0xff]   ;;  %v1314_v56 = vld [vmem:[#allocation7 + $0xa4] ss:$16 sps:$4 sm:$0xff]   ;;  %v1317_v57 = vld [vmem:[#allocation7 + $0xac] ss:$16 sps:$4 sm:$0xff]  }
  0x5e   :  { %278 = vmatpush1.bf16.msra.mxu0 %v1262_v19  ;;  %321 = vmatpush1.bf16.msra.mxu1 %v1263_v20  ;;  %v1312_v58 = vld [vmem:[#allocation7 + $0xa0] ss:$16 sps:$4 sm:$0xff]   ;;  %v1315_v59 = vld [vmem:[#allocation7 + $0xa8] ss:$16 sps:$4 sm:$0xff]   ;;  %v1320_v60 = vld [vmem:[#allocation7 + $0xc4] ss:$16 sps:$4 sm:$0xff]  }
  0x5f   :  { %279 = vmatprep.subr.bf16.mxu0 %v1264_v21  ;;  %322 = vmatprep.subr.bf16.mxu1 %v1266_v22  ;;  %v1323_v61 = vld [vmem:[#allocation7 + $0xcc] ss:$16 sps:$4 sm:$0xff]   ;;  %v1318_v62 = vld [vmem:[#allocation7 + $0xc0] ss:$16 sps:$4 sm:$0xff]   ;;  %v1321_v63 = vld [vmem:[#allocation7 + $0xc8] ss:$16 sps:$4 sm:$0xff]  }
  0x60   :  { %v1329_v1 = vld [vmem:[#allocation7 + $0xec] ss:$16 sps:$4 sm:$0xff]   ;;  %v1324_v2 = vld [vmem:[#allocation7 + $0xe0] ss:$16 sps:$4 sm:$0xff]   ;;  %v1327_v3 = vld [vmem:[#allocation7 + $0xe8] ss:$16 sps:$4 sm:$0xff]  }
  0x61   :  { %v1330_v4 = vld [vmem:[#allocation8 + $0x40] sm:$0xff]   ;;  %v1334_v8 = vld [vmem:[#allocation8 + $0x48] sm:$0xff]   ;;  %v1338_v12 = vld [vmem:[#allocation8 + $0x50] sm:$0xff]   ;;  %s1060_s15 = sshll.u32 %s1523_s3, 4  ;;  %s1061_s15 = int_to_ptr.vmem [resolvable:$true] %s1060_s15 }
  0x62   :  { %280 = vmatpush1.bf16.msra.mxu0 %v1268_v23  ;;  %323 = vmatpush1.bf16.msra.mxu1 %v1269_v24  ;;  %v1331_v5 = vld [vmem:[#allocation8 + $0xc0] sm:$0xff]   ;;  %v1335_v9 = vld [vmem:[#allocation8 + $0xc8] sm:$0xff]   ;;  %v1339_v13 = vld [vmem:[#allocation8 + $0xd0] sm:$0xff]   ;;  %s1482_s16 = scalar_lea.vmem %s1061_s15, 256  ;;  %p1487_p5 = scmp.lt.s32.totalorder %s1061_s15, %s1061_s15 }
  0x63   :  { %281 = vmatprep.subr.bf16.mxu0 %v1270_v25  ;;  %324 = vmatprep.subr.bf16.mxu1 %v1272_v26  ;;  %v1332_v6 = vld [vmem:[#allocation8] sm:$0xff]   ;;  %v1336_v10 = vld [vmem:[#allocation8 + $0x8] sm:$0xff]   ;;  %v1340_v14 = vld [vmem:[#allocation8 + $0x10] sm:$0xff]   ;;  %p1483_p4 = scmp.ne.s32.totalorder %s1061_s15, %s1482_s16  ;;  %p1488_p6 = scmp.lt.s32.totalorder %s1482_s16, %s1482_s16 }
  0x64   :  { %v1333_v7 = vld [vmem:[#allocation8 + $0x80] sm:$0xff]   ;;  %v1337_v11 = vld [vmem:[#allocation8 + $0x88] sm:$0xff]   ;;  %v1341_v15 = vld [vmem:[#allocation8 + $0x90] sm:$0xff]  }
  0x65   :  { %v1342_v16 = vld [vmem:[#allocation8 + $0x58] sm:$0xff]   ;;  %v1346_v20 = vld [vmem:[#allocation8 + $0x60] sm:$0xff]   ;;  %v1350_v24 = vld [vmem:[#allocation8 + $0x68] sm:$0xff]   ;;  %p1489_p7 = por %p1488_p6, %p1487_p5 }
  0x66   :  { %282 = vmatpush1.bf16.msra.mxu0 %v1274_v27  ;;  %325 = vmatpush1.bf16.msra.mxu1 %v1275_v28  ;;  %v1343_v17 = vld [vmem:[#allocation8 + $0xd8] sm:$0xff]   ;;  %v1347_v21 = vld [vmem:[#allocation8 + $0xe0] sm:$0xff]   ;;  %v1351_v25 = vld [vmem:[#allocation8 + $0xe8] sm:$0xff]  }
  0x67   :  { %283 = vmatprep.subr.bf16.mxu0 %v1276_v29  ;;  %326 = vmatprep.subr.bf16.mxu1 %v1278_v30  ;;  %v1344_v18 = vld [vmem:[#allocation8 + $0x18] sm:$0xff]   ;;  %v1348_v22 = vld [vmem:[#allocation8 + $0x20] sm:$0xff]   ;;  %v1352_v26 = vld [vmem:[#allocation8 + $0x28] sm:$0xff]   ;;  %p1490_p8 = pnand %p1489_p7, %p1483_p4 }
  0x68   :  { %v1345_v19 = vld [vmem:[#allocation8 + $0x98] sm:$0xff]   ;;  %v1349_v23 = vld [vmem:[#allocation8 + $0xa0] sm:$0xff]   ;;  %v1353_v27 = vld [vmem:[#allocation8 + $0xa8] sm:$0xff]  }
  0x69   :  { %v1354_v28 = vld [vmem:[#allocation8 + $0x70] sm:$0xff]   ;;  %v1359_v33 = vld [vmem:[#allocation8 + $0xf8] sm:$0xff]  }
  0x6a   :  { %284 = vmatpush1.bf16.msra.mxu0 %v1280_v31  ;;  %327 = vmatpush1.bf16.msra.mxu1 %v1281_v32  ;;  %v1355_v29 = vld [vmem:[#allocation8 + $0xf0] sm:$0xff]   ;;  %v1358_v32 = vld [vmem:[#allocation8 + $0x78] sm:$0xff]  }
  0x6b   :  { %547 = vmatprep.subr.bf16.mxu0 %v1284_v35  ;;  %590 = vmatprep.subr.bf16.mxu1 %v1287_v36  ;;  %v1356_v30 = vld [vmem:[#allocation8 + $0x30] sm:$0xff]   ;;  %v1360_v34 = vld [vmem:[#allocation8 + $0x38] sm:$0xff]  }
  0x6c   :  { %v1357_v31 = vld [vmem:[#allocation8 + $0xb0] sm:$0xff]   ;;  %v1361_v35 = vld [vmem:[#allocation8 + $0xb8] sm:$0xff]  }
  0x6d   :  { %302 = vmatmul.mubr.bf16.vlgmr.msra.gmra.mrb[0].mxu0 %v1615_v37  ;;  %345 = vmatmul.mubr.bf16.vlgmr.msra.gmra.mrb[0].mxu1 %v1615_v37 }
  0x6e   :  { %548 = vmatpush1.bf16.msra.mxu0 %v1282_v38  ;;  %591 = vmatpush1.bf16.msra.mxu1 %v1285_v39 }
  0x6f   :  { %549 = vmatprep.subr.bf16.mxu0 %v1290_v40  ;;  %592 = vmatprep.subr.bf16.mxu1 %v1293_v41 }
  0x70   :  { %579 = vmatprep.mubr.bf16.mxu0 %v1522_v0  ;;  %622 = vmatprep.mubr.bf16.mxu1 %v1522_v0  ;;  %v1326_v0 = vld [vmem:[#allocation7 + $0xe4] ss:$16 sps:$4 sm:$0xff]  }
  0x72   :  { %550 = vmatpush1.bf16.msra.mxu0 %v1288_v42  ;;  %593 = vmatpush1.bf16.msra.mxu1 %v1291_v43 }
  0x73   :  { %551 = vmatprep.subr.bf16.mxu0 %v1296_v44  ;;  %594 = vmatprep.subr.bf16.mxu1 %v1299_v45 }
  0x76   :  { %552 = vmatpush1.bf16.msra.mxu0 %v1294_v46  ;;  %595 = vmatpush1.bf16.msra.mxu1 %v1297_v47 }
  0x77   :  { %553 = vmatprep.subr.bf16.mxu0 %v1302_v48  ;;  %596 = vmatprep.subr.bf16.mxu1 %v1305_v49 }
  0x7a   :  { %554 = vmatpush1.bf16.msra.mxu0 %v1300_v50  ;;  %597 = vmatpush1.bf16.msra.mxu1 %v1303_v51 }
  0x7b   :  { %555 = vmatprep.subr.bf16.mxu0 %v1308_v52  ;;  %598 = vmatprep.subr.bf16.mxu1 %v1311_v53 }
  0x7e   :  { %556 = vmatpush1.bf16.msra.mxu0 %v1306_v54  ;;  %599 = vmatpush1.bf16.msra.mxu1 %v1309_v55 }
  0x7f   :  { %557 = vmatprep.subr.bf16.mxu0 %v1314_v56  ;;  %600 = vmatprep.subr.bf16.mxu1 %v1317_v57 }
  0x82   :  { %558 = vmatpush1.bf16.msra.mxu0 %v1312_v58  ;;  %601 = vmatpush1.bf16.msra.mxu1 %v1315_v59 }
  0x83   :  { %559 = vmatprep.subr.bf16.mxu0 %v1320_v60  ;;  %602 = vmatprep.subr.bf16.mxu1 %v1323_v61 }
  0x86   :  { %560 = vmatpush1.bf16.msra.mxu0 %v1318_v62  ;;  %603 = vmatpush1.bf16.msra.mxu1 %v1321_v63 }
  0x87   :  { %561 = vmatprep.subr.bf16.mxu0 %v1326_v0  ;;  %604 = vmatprep.subr.bf16.mxu1 %v1329_v1 }
  0x8a   :  { %562 = vmatpush1.bf16.msra.mxu0 %v1324_v2  ;;  %605 = vmatpush1.bf16.msra.mxu1 %v1327_v3 }
  0x8b   :  { %1178 = vmatprep.subr.bf16.mxu0 %v1330_v4  ;;  %1200 = vmatprep.subr.bf16.mxu1 %v1331_v5 }
  0x8d   :  { %580 = vmatmul.mubr.bf16.vlgmr.msra.gmra.mrb[4].mxu0 %v1615_v37  ;;  %623 = vmatmul.mubr.bf16.vlgmr.msra.gmra.mrb[4].mxu1 %v1615_v37 }
  0x8e   :  { %1179 = vmatpush3.bf16.msra.mxu0 %v1332_v6  ;;  %1201 = vmatpush3.bf16.msra.mxu1 %v1333_v7 }
  0x8f   :  { %1180 = vmatprep.subr.bf16.mxu0 %v1334_v8  ;;  %1202 = vmatprep.subr.bf16.mxu1 %v1335_v9 }
  0x92   :  { %1181 = vmatpush3.bf16.msra.mxu0 %v1336_v10  ;;  %1203 = vmatpush3.bf16.msra.mxu1 %v1337_v11 }
  0x93   :  { %1182 = vmatprep.subr.bf16.mxu0 %v1338_v12  ;;  %1204 = vmatprep.subr.bf16.mxu1 %v1339_v13 }
  0x96   :  { %1183 = vmatpush3.bf16.msra.mxu0 %v1340_v14  ;;  %1205 = vmatpush3.bf16.msra.mxu1 %v1341_v15 }
  0x97   :  { %1184 = vmatprep.subr.bf16.mxu0 %v1342_v16  ;;  %1206 = vmatprep.subr.bf16.mxu1 %v1343_v17 }
  0x9a   :  { %1185 = vmatpush3.bf16.msra.mxu0 %v1344_v18  ;;  %1207 = vmatpush3.bf16.msra.mxu1 %v1345_v19 }
  0x9b   :  { %1186 = vmatprep.subr.bf16.mxu0 %v1346_v20  ;;  %1208 = vmatprep.subr.bf16.mxu1 %v1347_v21 }
  0x9e   :  { %1187 = vmatpush3.bf16.msra.mxu0 %v1348_v22  ;;  %1209 = vmatpush3.bf16.msra.mxu1 %v1349_v23 }
  0x9f   :  { %1188 = vmatprep.subr.bf16.mxu0 %v1350_v24  ;;  %1210 = vmatprep.subr.bf16.mxu1 %v1351_v25 }
  0xa2   :  { %1189 = vmatpush3.bf16.msra.mxu0 %v1352_v26  ;;  %1211 = vmatpush3.bf16.msra.mxu1 %v1353_v27 }
  0xa3   :  { %1190 = vmatprep.subr.bf16.mxu0 %v1354_v28  ;;  %1212 = vmatprep.subr.bf16.mxu1 %v1355_v29 }
  0xa6   :  { %1191 = vmatpush3.bf16.msra.mxu0 %v1356_v30  ;;  %1213 = vmatpush3.bf16.msra.mxu1 %v1357_v31 }
  0xa7   :  { %1192 = vmatprep.subr.bf16.mxu0 %v1358_v32  ;;  %1214 = vmatprep.subr.bf16.mxu1 %v1359_v33 }
  0xaa   :  { %1193 = vmatpush3.bf16.msra.mxu0 %v1360_v34  ;;  %1215 = vmatpush3.bf16.msra.mxu1 %v1361_v35 }
 0x140   :  { %v303_v36 = vpop.f32.mrb[0].mxu0  ;;  %v346_v37 = vpop.f32.mrb[0].mxu1 }
 0x141   :  { %v1138_v38 = vmul.f32 -1.442695, %v303_v36  ;;  %v1140_v39 = vmul.f32 -1.442695, %v346_v37  ;;  %v305_v40 = vpop.f32.mrb[1].mxu0  ;;  %v348_v41 = vpop.f32.mrb[1].mxu1 }
 0x142   :  { %v1139_v42 = vmul.f32 -1.442695, %v305_v40  ;;  %v1141_v43 = vmul.f32 -1.442695, %v348_v41  ;;  %v307_v44 = vpop.f32.mrb[2].mxu0  ;;  %v350_v45 = vpop.f32.mrb[2].mxu1 }
 0x143   :  { %1362 = vpow2.f32 %v1138_v38  ;;  %v1142_v46 = vmul.f32 -1.442695, %v307_v44  ;;  %v309_v47 = vpop.f32.mrb[3].mxu0  ;;  %v352_v48 = vpop.f32.mrb[3].mxu1  ;;  %v1144_v49 = vmul.f32 -1.442695, %v350_v45 }
 0x144   :  { %1364 = vpow2.f32 %v1140_v39  ;;  %v1143_v50 = vmul.f32 -1.442695, %v309_v47  ;;  %v1145_v51 = vmul.f32 -1.442695, %v352_v48 }
 0x145   :  { %1366 = vpow2.f32 %v1139_v42 }
 0x146   :  { %1368 = vpow2.f32 %v1141_v43 }
 0x147   :  { %1370 = vpow2.f32 %v1142_v46 }
 0x148   :  { %1372 = vpow2.f32 %v1144_v49 }
 0x149   :  { %1374 = vpow2.f32 %v1143_v50 }
 0x14a   :  { %1376 = vpow2.f32 %v1145_v51 }
 0x14d   :  { %v1363_v52 = vpop.eup %1362 }
 0x14e   :  { %v1365_v53 = vpop.eup %1364  ;;  %v657_v54 = vadd.f32 1.0, %v1363_v52 }
 0x14f   :  { %v1367_v55 = vpop.eup %1366  ;;  %v659_v56 = vadd.f32 1.0, %v1365_v53 }
 0x150   :  { %v1369_v57 = vpop.eup %1368  ;;  %1378 = vrcp.f32 %v657_v54  ;;  %v658_v58 = vadd.f32 1.0, %v1367_v55 }
 0x151   :  { %v1371_v59 = vpop.eup %1370  ;;  %1380 = vrcp.f32 %v659_v56  ;;  %v660_v60 = vadd.f32 1.0, %v1369_v57 }
 0x152   :  { %v1373_v61 = vpop.eup %1372  ;;  %1382 = vrcp.f32 %v658_v58  ;;  %v661_v62 = vadd.f32 1.0, %v1371_v59 }
 0x153   :  { %v1375_v63 = vpop.eup %1374  ;;  %1384 = vrcp.f32 %v660_v60  ;;  %v663_v0 = vadd.f32 1.0, %v1373_v61 }
 0x154   :  { %v1377_v1 = vpop.eup %1376  ;;  %1386 = vrcp.f32 %v661_v62  ;;  %v662_v2 = vadd.f32 1.0, %v1375_v63 }
 0x155   :  { %1388 = vrcp.f32 %v663_v0  ;;  %v664_v3 = vadd.f32 1.0, %v1377_v1 }
 0x156   :  { %1390 = vrcp.f32 %v662_v2 }
 0x157   :  { %1392 = vrcp.f32 %v664_v3 }
 0x15a   :  { %v1379_v4 = vpop.eup %1378 }
 0x15b   :  { %v1381_v5 = vpop.eup %1380  ;;  %v681_v10 = vmul.f32 %v1379_v4, %v303_v36 }
 0x15c   :  { %v1383_v6 = vpop.eup %1382  ;;  %v683_v11 = vmul.f32 %v1381_v5, %v346_v37 }
 0x15d   :  { %v1385_v7 = vpop.eup %1384  ;;  %v682_v13 = vmul.f32 %v1383_v6, %v305_v40 }
 0x15e   :  { %v1387_v8 = vpop.eup %1386  ;;  %v684_v14 = vmul.f32 %v1385_v7, %v348_v41 }
 0x15f   :  { %v1389_v9 = vpop.eup %1388  ;;  %v685_v18 = vmul.f32 %v1387_v8, %v307_v44 }
 0x160   :  { %v1391_v12 = vpop.eup %1390  ;;  %v581_v15 = vpop.f32.mrb[4].mxu0  ;;  %v687_v19 = vmul.f32 %v1389_v9, %v350_v45 }
 0x161   :  { %v624_v16 = vpop.f32.mrb[4].mxu1  ;;  %v1393_v17 = vpop.eup %1392  ;;  %v689_v20 = vmul.f32 %v681_v10, %v581_v15  ;;  %v686_v24 = vmul.f32 %v1391_v12, %v309_v47 }
 0x162   :  { %v691_v21 = vmul.f32 %v683_v11, %v624_v16  ;;  %v583_v22 = vpop.f32.mrb[5].mxu0  ;;  %v626_v23 = vpop.f32.mrb[5].mxu1  ;;  %v688_v25 = vmul.f32 %v1393_v17, %v352_v48 }
 0x163   :  { %v690_v26 = vmul.f32 %v682_v13, %v583_v22  ;;  %v692_v27 = vmul.f32 %v684_v14, %v626_v23  ;;  %v585_v28 = vpop.f32.mrb[6].mxu0  ;;  %v628_v29 = vpop.f32.mrb[6].mxu1 }
 0x164   :  { %v693_v30 = vmul.f32 %v685_v18, %v585_v28  ;;  %v695_v31 = vmul.f32 %v687_v19, %v628_v29  ;;  %v587_v32 = vpop.f32.mrb[7].mxu0  ;;  %v630_v33 = vpop.f32.mrb[7].mxu1 }
 0x165   :  { %v694_v34 = vmul.f32 %v686_v24, %v587_v32  ;;  %v696_v35 = vmul.f32 %v688_v25, %v630_v33 }
 0x166   :  { %v697_v36 = vpack.c.bf16 %v693_v30, %v689_v20  ;;  %v699_v37 = vpack.c.bf16 %v695_v31, %v691_v21 }
 0x167   :  { %v698_v38 = vpack.c.bf16 %v694_v34, %v690_v26  ;;  %v700_v39 = vpack.c.bf16 %v696_v35, %v692_v27 }
 0x169   :  { %989 = vmatprep.mubr.bf16.mxu0 %v698_v38  ;;  %1030 = vmatprep.mubr.bf16.mxu1 %v700_v39 }
 0x16a   :  { %990 = vmatmul.mubr.bf16.vlgmr.msra.gmra.mrb[8].mxu0 %v697_v36  ;;  %1031 = vmatmul.mubr.bf16.vlgmr.msra.gmra.mrb[8].mxu1 %v699_v37 }
 0x23d   :  { %v1194_v40 = vpop.f32.mrb[8].mxu0  ;;  %v1216_v41 = vpop.f32.mrb[8].mxu1 }
 0x23e   :  { %v1195_v42 = vpop.f32.mrb[9].mxu0  ;;  %v1217_v43 = vpop.f32.mrb[9].mxu1 }
 0x23f   :  { %v1196_v44 = vadd.f32 %v1195_v42, %v1194_v40  ;;  %v1218_v45 = vadd.f32 %v1217_v43, %v1216_v41  ;;  %v1197_v46 = vpop.f32.mrb[10].mxu0  ;;  %v1219_v47 = vpop.f32.mrb[10].mxu1 }
 0x240   :  { %v1198_v48 = vpop.f32.mrb[11].mxu0  ;;  %v1220_v49 = vpop.f32.mrb[11].mxu1 }
 0x241   :  { %v1033_v50 = vadd.f32 %v1218_v45, %v1196_v44  ;;  %v1199_v51 = vadd.f32 %v1198_v48, %v1197_v46  ;;  %v1221_v52 = vadd.f32 %v1220_v49, %v1219_v47 }
 0x243   :  { %1043 = vst [vmem:[#allocation10] sm:$0xff] %v1033_v50  ;;  %v1036_v53 = vadd.f32 %v1221_v52, %v1199_v51 }
 0x245   :  { %1044 = vst [vmem:[#allocation10 + $0x8] sm:$0xff] %v1036_v53 }
 0x246   :  { %1493 = shalt.err (!%p1490_p8)
}
 0x247   :  { %s1494_s19 = scalar_lea.hbm %s1642_s4, 256 }
 0x248   :  { %p1495_p9 = scmp.ne.s32.totalorder %s1642_s4, %s1494_s19  ;;  %p1498_p10 = scmp.lt.u32.totalorder %s1494_s19, %s1642_s4 }
 0x24a   :  { %p1500_p11 = pnand %p1498_p10, %p1495_p9 }
 0x24c   :  { %1503 = shalt.err (!%p1500_p11)
}
 0x24d   :  { %1066 = dma.vmem_to_hbm [thread:$0]  %s1061_s15, 256, %s1642_s4, [#allocation4], %s1516_s1, %s1516_s1, %s1517_s13  }
 0x24e   :  { %1510 = dma.done.wait [#allocation4], 256  }
 0x24f   :  { %1511 = vsyncadd [#allocation4], 4294967040 }
 0x250   :  { %1070 = vsyncpa [#allocation3], 1 }
 0x251   :  { %1071 = vsyncpa [#allocation6], 1 }
 0x252   :  { %1072 = vsyncpa [#allocation9], 1 }
 0x253   :  { %1073 = vsyncpa [#allocation4], 1 }

</bundles_post_ra>
